<compile_context>
chip_gen: v6e
topology: v6e:2x2x1
jax: 0.10.0
libtpu: 0.0.40
codegen_flags: <defaults>
</compile_context>

<pallas_src>
import functools

import jax
import jax.numpy as jnp
from jax.experimental import pallas as pl
from jax.experimental.pallas import tpu as pltpu


def _round_up(x, m):
    return ((x + m - 1) // m) * m


def _attention_kernel(x_ref, w_ref, b_ref, o_ref, *, bb, t, n_pad):
    # x_ref: (BB*T, n_in); w_ref: (n_in, 2*n_pad); b_ref: (1, 2*n_pad); o_ref: (BB, n_pad)
    x = x_ref[...]

    # Fused [att | cla] 1x1 conv == one MXU matmul over the channel axis.
    logits = (
        jnp.dot(x, w_ref[...], preferred_element_type=jnp.float32) + b_ref[...]
    )  # (BB*T, 2*n_pad)

    att = jax.nn.sigmoid(logits[:, :n_pad])   # lane-aligned static slice
    cla = jax.nn.sigmoid(logits[:, n_pad:])

    eps = jnp.float32(1e-07)
    att = jnp.clip(att, eps, jnp.float32(1.0) - eps)

    # Per-batch time reduction as a 0/1 segment-pooling matmul (no reshapes needed):
    #   pool[b, r] = 1  iff  b*T <= r < (b+1)*T
    r_idx = jax.lax.broadcasted_iota(jnp.int32, (bb, bb * t), 1)
    b_lo = jax.lax.broadcasted_iota(jnp.int32, (bb, bb * t), 0) * t
    pool = ((r_idx >= b_lo) & (r_idx < b_lo + t)).astype(jnp.float32)  # (BB, BB*T)

    att_sum = jnp.dot(pool, att, preferred_element_type=jnp.float32)         # (BB, n_pad)
    weighted = jnp.dot(pool, att * cla, preferred_element_type=jnp.float32)  # (BB, n_pad)

    # pooled = sum_T(norm_att * cla) = sum_T(att*cla) / sum_T(att); then hardtanh(0, 1).
    pooled = weighted / att_sum
    o_ref[...] = jnp.clip(pooled, 0.0, 1.0).astype(o_ref.dtype)


def attention_forward(x_nchw, w_att, b_att, w_cla, b_cla, *, block_b=8):
    """x_nchw: (B, n_in, T, 1) f32; weights (n_in, n_out); biases (n_out,). -> (B, n_out)."""
    B, n_in, T, W = x_nchw.shape
    assert W == 1, "last (width) dim must be 1, as in the PyTorch module"
    n_out = w_att.shape[1]

    bb = max(8, _round_up(block_b, 8))        # keeps BB*T a multiple of 8 (sublane tiling)
    b_pad = _round_up(max(B, bb), bb)
    n_pad = _round_up(max(n_out, 128), 128)   # lane-dense output / full MXU N tiles

    # NCHW -> channels-last rows (B*T, n_in).
    # TODO(synk): this transpose is wrapper-side HBM traffic; a channels-last producer
    # upstream would remove it, but channels-last gives the lane-dense in-kernel layout.
    x_btc = jnp.transpose(x_nchw[:, :, :, 0], (0, 2, 1)).astype(jnp.float32)
    if b_pad != B:
        x_btc = jnp.pad(x_btc, ((0, b_pad - B), (0, 0), (0, 0)))
    x_rows = x_btc.reshape(b_pad * T, n_in)

    # Fuse [att | cla] weights along N, each zero-padded to n_pad columns.
    w_f = jnp.zeros((n_in, 2 * n_pad), jnp.float32)
    w_f = w_f.at[:, :n_out].set(w_att.astype(jnp.float32))
    w_f = w_f.at[:, n_pad:n_pad + n_out].set(w_cla.astype(jnp.float32))
    b_f = jnp.zeros((1, 2 * n_pad), jnp.float32)
    b_f = b_f.at[0, :n_out].set(b_att.astype(jnp.float32))
    b_f = b_f.at[0, n_pad:n_pad + n_out].set(b_cla.astype(jnp.float32))

    kernel = functools.partial(_attention_kernel, bb=bb, t=T, n_pad=n_pad)

    grid_spec = pltpu.PrefetchScalarGridSpec(
        num_scalar_prefetch=0,
        grid=(b_pad // bb,),
        in_specs=[
            pl.BlockSpec((bb * T, n_in), lambda i: (i, 0)),      # x rows, BB batches/step
            pl.BlockSpec((n_in, 2 * n_pad), lambda i: (0, 0)),   # fused weights (resident)
            pl.BlockSpec((1, 2 * n_pad), lambda i: (0, 0)),      # fused bias (resident)
        ],
        out_specs=pl.BlockSpec((bb, n_pad), lambda i: (i, 0)),
    )

    out_padded = pl.pallas_call(
        kernel,
        out_shape=jax.ShapeDtypeStruct((b_pad, n_pad), jnp.float32),
        grid_spec=grid_spec,
        compiler_params=pltpu.CompilerParams(
            dimension_semantics=("parallel",),
        ),
    )(x_rows, w_f, b_f)

    return out_padded[:B, :n_out]


def attention_reference(x_nchw, w_att, b_att, w_cla, b_cla):
    """Pure-JAX reference mirroring the PyTorch forward."""
    x = x_nchw[:, :, :, 0]                                   # (B, n_in, T)
    att = jnp.einsum("oc,bct->bot", w_att.T, x) + b_att[None, :, None]
    cla = jnp.einsum("oc,bct->bot", w_cla.T, x) + b_cla[None, :, None]
    att = jax.nn.sigmoid(att)
    cla = jax.nn.sigmoid(cla)
    eps = 1e-07
    att = jnp.clip(att, eps, 1.0 - eps)
    norm_att = att / jnp.sum(att, axis=2)[:, :, None]
    out = jnp.sum(norm_att * cla, axis=2)
    return jnp.clip(out, 0.0, 1.0)


if __name__ == "__main__":
    B, n_in, T, n_out = 2, 32, 10, 6

    key = jax.random.PRNGKey(0)
    kx, kwa, kba, kwc, kbc = jax.random.split(key, 5)

    # input: (samples_num, freq_bins, time_steps, 1)
    x = jax.random.normal(kx, (B, n_in, T, 1), dtype=jnp.float32)

    # Deterministic Xavier-like init (Conv2d 1x1 weights, stored as (n_in, n_out)).
    scale = (6.0 / (n_in + n_out)) ** 0.5
    w_att = jax.random.uniform(kwa, (n_in, n_out), jnp.float32, -scale, scale)
    w_cla = jax.random.uniform(kwc, (n_in, n_out), jnp.float32, -scale, scale)
    b_att = jax.random.uniform(kba, (n_out,), jnp.float32, -0.1, 0.1)
    b_cla = jax.random.uniform(kbc, (n_out,), jnp.float32, -0.1, 0.1)

    out = attention_forward(x, w_att, b_att, w_cla, b_cla)
    out = jax.block_until_ready(out)

    ref = attention_reference(x, w_att, b_att, w_cla, b_cla)
    assert out.shape == (B, n_out)
    assert jnp.allclose(out, ref, atol=1e-5, rtol=1e-5), (out, ref)

    print("KERNEL_OK")
</pallas_src>

<mosaic_0001>
module attributes {stable_mosaic.version = 11 : i64} {
  func.func @_attention_kernel(%arg0: i32, %arg1: memref<80x32xf32, #tpu.memory_space<vmem>>, %arg2: memref<32x256xf32, #tpu.memory_space<vmem>>, %arg3: memref<1x256xf32, #tpu.memory_space<vmem>>, %arg4: memref<8x128xf32, #tpu.memory_space<vmem>>) attributes {dimension_semantics = [#tpu.dimension_semantics<parallel>], iteration_bounds = array<i64: 1>, scalar_prefetch = 0 : i64, scratch_operands = 0 : i64, tpu.core_type = #tpu.core_type<tc>, window_params = [{transform_indices = @transform_0, window_bounds = array<i64: 80, 32>}, {pipeline_mode = #tpu.pipeline_mode<synchronous>, transform_indices = @transform_1, window_bounds = array<i64: 32, 256>}, {pipeline_mode = #tpu.pipeline_mode<synchronous>, transform_indices = @transform_2, window_bounds = array<i64: 1, 256>}, {transform_indices = @transform_3, window_bounds = array<i64: 8, 128>}]} {
    %c0 = arith.constant 0 : index
    %c0_0 = arith.constant 0 : index
    %0 = vector.load %arg1[%c0, %c0_0] : memref<80x32xf32, #tpu.memory_space<vmem>>, vector<80x32xf32>
    %c0_1 = arith.constant 0 : index
    %c0_2 = arith.constant 0 : index
    %1 = vector.load %arg2[%c0_1, %c0_2] : memref<32x256xf32, #tpu.memory_space<vmem>>, vector<32x256xf32>
    %cst = arith.constant dense<0.000000e+00> : vector<80x256xf32>
    %2 = tpu.matmul %0, %1, %cst {dimension_numbers = #tpu.dot_dimension_numbers<[1], [0], [0], [1], [0, 0, 1, 1], [], []>} : vector<80x32xf32>, vector<32x256xf32>, vector<80x256xf32> -> vector<80x256xf32>
    %c0_3 = arith.constant 0 : index
    %c0_4 = arith.constant 0 : index
    %3 = vector.load %arg3[%c0_3, %c0_4] : memref<1x256xf32, #tpu.memory_space<vmem>>, vector<1x256xf32>
    %4 = vector.broadcast %3 : vector<1x256xf32> to vector<80x256xf32>
    %5 = arith.addf %2, %4 : vector<80x256xf32>
    %6 = vector.extract_strided_slice %5 {offsets = [0, 0], sizes = [80, 128], strides = [1, 1]} : vector<80x256xf32> to vector<80x128xf32>
    %7 = arith.negf %6 : vector<80x128xf32>
    %8 = math.exp %7 : vector<80x128xf32>
    %cst_5 = arith.constant 1.000000e+00 : f32
    %9 = vector.broadcast %cst_5 : f32 to vector<80x128xf32>
    %10 = arith.addf %9, %8 : vector<80x128xf32>
    %11 = arith.divf %9, %10 : vector<80x128xf32>
    %12 = vector.extract_strided_slice %5 {offsets = [0, 128], sizes = [80, 128], strides = [1, 1]} : vector<80x256xf32> to vector<80x128xf32>
    %13 = arith.negf %12 : vector<80x128xf32>
    %14 = math.exp %13 : vector<80x128xf32>
    %cst_6 = arith.constant 1.000000e+00 : f32
    %15 = vector.broadcast %cst_6 : f32 to vector<80x128xf32>
    %16 = arith.addf %15, %14 : vector<80x128xf32>
    %17 = arith.divf %15, %16 : vector<80x128xf32>
    %cst_7 = arith.constant 1.000000e+00 : f32
    %cst_8 = arith.constant 1.000000e-07 : f32
    %18 = arith.subf %cst_7, %cst_8 : f32
    %cst_9 = arith.constant 1.000000e-07 : f32
    %19 = vector.broadcast %cst_9 : f32 to vector<80x128xf32>
    %20 = arith.maximumf %19, %11 : vector<80x128xf32>
    %21 = vector.broadcast %18 : f32 to vector<80x128xf32>
    %22 = arith.minimumf %21, %20 : vector<80x128xf32>
    %23 = tpu.iota {dimensions = array<i32: 1>} : vector<8x80xi32>
    %24 = tpu.iota {dimensions = array<i32: 0>} : vector<8x80xi32>
    %c10_i32 = arith.constant 10 : i32
    %25 = vector.broadcast %c10_i32 : i32 to vector<8x80xi32>
    %26 = arith.muli %24, %25 : vector<8x80xi32>
    %27 = arith.cmpi sge, %23, %26 : vector<8x80xi32>
    %c10_i32_10 = arith.constant 10 : i32
    %28 = vector.broadcast %c10_i32_10 : i32 to vector<8x80xi32>
    %29 = arith.addi %26, %28 : vector<8x80xi32>
    %30 = arith.cmpi slt, %23, %29 : vector<8x80xi32>
    %31 = arith.andi %27, %30 : vector<8x80xi1>
    %32 = arith.extui %31 : vector<8x80xi1> to vector<8x80xi32>
    %33 = arith.sitofp %32 : vector<8x80xi32> to vector<8x80xf32>
    %cst_11 = arith.constant dense<0.000000e+00> : vector<8x128xf32>
    %34 = tpu.matmul %33, %22, %cst_11 {dimension_numbers = #tpu.dot_dimension_numbers<[1], [0], [0], [1], [0, 0, 1, 1], [], []>} : vector<8x80xf32>, vector<80x128xf32>, vector<8x128xf32> -> vector<8x128xf32>
    %35 = arith.mulf %22, %17 : vector<80x128xf32>
    %cst_12 = arith.constant dense<0.000000e+00> : vector<8x128xf32>
    %36 = tpu.matmul %33, %35, %cst_12 {dimension_numbers = #tpu.dot_dimension_numbers<[1], [0], [0], [1], [0, 0, 1, 1], [], []>} : vector<8x80xf32>, vector<80x128xf32>, vector<8x128xf32> -> vector<8x128xf32>
    %37 = arith.divf %36, %34 : vector<8x128xf32>
    %cst_13 = arith.constant 0.000000e+00 : f32
    %cst_14 = arith.constant 1.000000e+00 : f32
    %38 = vector.broadcast %cst_13 : f32 to vector<8x128xf32>
    %39 = arith.maximumf %38, %37 : vector<8x128xf32>
    %40 = vector.broadcast %cst_14 : f32 to vector<8x128xf32>
    %41 = arith.minimumf %40, %39 : vector<8x128xf32>
    %c0_15 = arith.constant 0 : index
    %c0_16 = arith.constant 0 : index
    %42 = vector.load %arg4[%c0_15, %c0_16] : memref<8x128xf32, #tpu.memory_space<vmem>>, vector<8x128xf32>
    tpu.vector_store %arg4[%c0_15, %c0_16], %41 {strides = array<i32>} : memref<8x128xf32, #tpu.memory_space<vmem>>, vector<8x128xf32>,
    return
  }
  func.func @transform_0(%arg0: i32) -> (i32, i32) {
    %c0_i32 = arith.constant 0 : i32
    %c0_i32_0 = arith.constant 0 : i32
    return %arg0, %c0_i32 : i32, i32
  }
  func.func @transform_1(%arg0: i32) -> (i32, i32) {
    %c0_i32 = arith.constant 0 : i32
    %c0_i32_0 = arith.constant 0 : i32
    %c0_i32_1 = arith.constant 0 : i32
    return %c0_i32, %c0_i32_0 : i32, i32
  }
  func.func @transform_2(%arg0: i32) -> (i32, i32) {
    %c0_i32 = arith.constant 0 : i32
    %c0_i32_0 = arith.constant 0 : i32
    %c0_i32_1 = arith.constant 0 : i32
    return %c0_i32, %c0_i32_0 : i32, i32
  }
  func.func @transform_3(%arg0: i32) -> (i32, i32) {
    %c0_i32 = arith.constant 0 : i32
    %c0_i32_0 = arith.constant 0 : i32
    return %arg0, %c0_i32 : i32, i32
  }
}

</mosaic_0001>

<bundles_post_ra>
// kernel: tpu_custom_call.1
= control target key start
LH: loop header
LB: loop body
LE: loop exit
PB: predicated region body
PF: predicated region fallthrough
CT: control target
= control target key end

     0   :  { %v733_v4 = vmov 0.0   ;;  %vm45_vm0 = vcmask 261120   ;;  %s915_s0 = inlined_call_operand.vmem [shape: f32[80,32], index: 0, kind: input, shape index: {}]   ;;  %s916_s1 = inlined_call_operand.vmem [shape: f32[32,256], index: 1, kind: input, shape index: {}]   ;;  %s917_s2 = inlined_call_operand.vmem [shape: f32[1,256], index: 2, kind: input, shape index: {}]   ;;  %s918_s3 = inlined_call_operand.hbm [shape: f32[8,128], index: 3, kind: output, shape index: {}]  }
   0x1   :  { %v32_v0 = vld [vmem:[%s916_s1 + $0x38] sm:$0xff]  ;;  %v31_v1 = vld [vmem:[%s916_s1 + $0x30] sm:$0xff]  ;;  %v30_v2 = vld [vmem:[%s916_s1 + $0x28] sm:$0xff]  ;;  %140 = vmatprep.mubr.f32.mxu0 %v733_v4  ;;  %580 = vmatprep.subr.mxu1 %v733_v4 }
   0x2   :  { %100 = vmatprep.subr.mxu0 %v32_v0  ;;  %v29_v3 = vld [vmem:[%s916_s1 + $0x20] sm:$0xff]  ;;  %v28_v5 = vld [vmem:[%s916_s1 + $0x18] sm:$0xff]  ;;  %v27_v6 = vld [vmem:[%s916_s1 + $0x10] sm:$0xff] }
   0x3   :  { %101 = vmatpush1.msra.mxu0 %v31_v1  ;;  %v26_v7 = vld [vmem:[%s916_s1 + $0x8] sm:$0xff]  ;;  %v25_v8 = vld [vmem:[%s916_s1] sm:$0xff] }
   0x4   :  { %102 = vmatprep.subr.mxu0 %v30_v2  ;;  %v15_v9 = vld [vmem:[%s915_s0] sm:$0xff] }
   0x5   :  { %103 = vmatpush1.msra.mxu0 %v29_v3 }
   0x6   :  { %104 = vmatprep.subr.mxu0 %v28_v5 }
   0x7   :  { %105 = vmatpush1.msra.mxu0 %v27_v6 }
   0x8   :  { %8 = vsyncpa [#allocation3], 0  ;;  %106 = vmatprep.subr.mxu0 %v26_v7  ;;  %v16_v10 = vld [vmem:[%s915_s0 + $0x8] sm:$0xff]  ;;  %v17_v11 = vld [vmem:[%s915_s0 + $0x10] sm:$0xff]  ;;  %vm734_vm1 = vmmov 0   ;;  %v35_v27 = vlaneseq  ;;  %vm352_vm5 = vcmask 654336  }
   0x9   :  { %107 = vmatpush1.msra.mxu0 %v25_v8  ;;  %v18_v12 = vld [vmem:[%s915_s0 + $0x18] sm:$0xff]  ;;  %v19_v13 = vld [vmem:[%s915_s0 + $0x20] sm:$0xff]  ;;  %v20_v14 = vld [vmem:[%s915_s0 + $0x28] sm:$0xff]  ;;  %600 = vmatprep.mubr.msk.f32.mxu1 %vm734_vm1, %v733_v4 }
   0xa   :  { %525 = vmatmul.mubr.msk.f32.vlgmr.msra.gmra.mxu0 %vm45_vm0, %v15_v9  ;;  %v21_v15 = vld [vmem:[%s915_s0 + $0x30] sm:$0xff]  ;;  %v22_v16 = vld [vmem:[%s915_s0 + $0x38] sm:$0xff]  ;;  %v23_v17 = vld [vmem:[%s915_s0 + $0x40] sm:$0xff]  ;;  %v844_v30 = vshrl.u32 %v35_v27, 7 }
   0xb   :  { %146 = vmatprep.mubr.f32.mxu0 %v733_v4  ;;  %v24_v18 = vld [vmem:[%s915_s0 + $0x48] sm:$0xff]  ;;  %v33_v34 = vld [vmem:[%s917_s2] sm:$0x3]  ;;  %s735_s2 = smov [#allocation2]  }
   0xc   :  { %v37_v33 = vsub.s32 0, %v844_v30  ;;  %v41_v61 = vsub.s32 1, %v844_v30  ;;  %s517_s21 = sshll.u32 %s735_s2, 4  ;;  %s518_s21 = int_to_ptr.vmem [resolvable:$true] %s517_s21 }
   0xd   :  { %s711_s22 = scalar_lea.vmem %s518_s21, 128  ;;  %p716_p1 = scmp.lt.s32.totalorder %s518_s21, %s518_s21 }
   0xe   :  { %526 = vmatmul.mubr.msk.f32.gmra.mxu0 %vm45_vm0, %v16_v10  ;;  %v38_v37 = vrot.slane %v33_v34, %v37_v33  ;;  %v42_v1 = vrot.slane %v33_v34, %v41_v61  ;;  %v345_v61 = vmul.u32 10, %v844_v30  ;;  %p712_p0 = scmp.ne.s32.totalorder %s518_s21, %s711_s22  ;;  %p717_p2 = scmp.lt.s32.totalorder %s711_s22, %s711_s22 }
   0xf   :  { %152 = vmatprep.mubr.f32.mxu0 %v733_v4 }
  0x10   :  { %p718_p3 = por %p717_p2, %p716_p1 }
  0x12   :  { %527 = vmatmul.mubr.msk.f32.gmra.mxu0 %vm45_vm0, %v17_v11  ;;  %p719_p4 = pnand %p718_p3, %p712_p0 }
  0x13   :  { %158 = vmatprep.mubr.f32.mxu0 %v733_v4 }
  0x16   :  { %528 = vmatmul.mubr.msk.f32.gmra.mxu0 %vm45_vm0, %v18_v12 }
  0x17   :  { %164 = vmatprep.mubr.f32.mxu0 %v733_v4 }
  0x1a   :  { %529 = vmatmul.mubr.msk.f32.gmra.mxu0 %vm45_vm0, %v19_v13 }
  0x1b   :  { %170 = vmatprep.mubr.f32.mxu0 %v733_v4 }
  0x1e   :  { %530 = vmatmul.mubr.msk.f32.gmra.mxu0 %vm45_vm0, %v20_v14 }
  0x1f   :  { %176 = vmatprep.mubr.f32.mxu0 %v733_v4 }
  0x22   :  { %531 = vmatmul.mubr.msk.f32.gmra.mxu0 %vm45_vm0, %v21_v15 }
  0x23   :  { %182 = vmatprep.mubr.f32.mxu0 %v733_v4 }
  0x26   :  { %532 = vmatmul.mubr.msk.f32.gmra.mxu0 %vm45_vm0, %v22_v16 }
  0x27   :  { %188 = vmatprep.mubr.f32.mxu0 %v733_v4 }
  0x2a   :  { %533 = vmatmul.mubr.msk.f32.gmra.mxu0 %vm45_vm0, %v23_v17 }
  0x2b   :  { %194 = vmatprep.mubr.f32.mxu0 %v733_v4 }
  0x2e   :  { %534 = vmatmul.mubr.msk.f32.gmra.mxu0 %vm45_vm0, %v24_v18 }
  0xca   :  { %v142_v19 = vpop.f32.mrf.mxu0 }
  0xcb   :  { %v143_v59 = vadd.f32 %v142_v19, %v38_v37 }
  0xcc   :  { %v833_v20 = vpop.f32.mrf.mxu0 }
  0xcd   :  { %v535_v63 = vmul.f32 -1.442695, %v143_v59 }
  0xce   :  { %v148_v21 = vpop.f32.mrf.mxu0 }
  0xcf   :  { %v149_v57 = vadd.f32 %v148_v21, %v38_v37 }
  0xd0   :  { %v835_v22 = vpop.f32.mrf.mxu0 }
  0xd1   :  { %v536_v62 = vmul.f32 -1.442695, %v149_v57 }
  0xd2   :  { %v154_v23 = vpop.f32.mrf.mxu0 }
  0xd3   :  { %v155_v54 = vadd.f32 %v154_v23, %v38_v37 }
  0xd4   :  { %v837_v24 = vpop.f32.mrf.mxu0 }
  0xd5   :  { %v537_v60 = vmul.f32 -1.442695, %v155_v54 }
  0xd6   :  { %v160_v25 = vpop.f32.mrf.mxu0 }
  0xd7   :  { %v161_v52 = vadd.f32 %v160_v25, %v38_v37 }
  0xd8   :  { %v839_v26 = vpop.f32.mrf.mxu0 }
  0xd9   :  { %v538_v58 = vmul.f32 -1.442695, %v161_v52 }
  0xda   :  { %v166_v28 = vpop.f32.mrf.mxu0 }
  0xdb   :  { %v167_v47 = vadd.f32 %v166_v28, %v38_v37 }
  0xdc   :  { %v841_v29 = vpop.f32.mrf.mxu0 }
  0xdd   :  { %v539_v55 = vmul.f32 -1.442695, %v167_v47  ;;  %v169_v33 = vadd.f32 %v841_v29, %v42_v1 }
  0xde   :  { %v172_v31 = vpop.f32.mrf.mxu0 }
  0xdf   :  { %v173_v42 = vadd.f32 %v172_v31, %v38_v37 }
  0xe0   :  { %v846_v32 = vpop.f32.mrf.mxu0 }
  0xe1   :  { %v540_v50 = vmul.f32 -1.442695, %v173_v42  ;;  %v175_v23 = vadd.f32 %v846_v32, %v42_v1  ;;  %v549_v32 = vmul.f32 -1.442695, %v169_v33  ;;  %v157_v42 = vadd.f32 %v837_v24, %v42_v1 }
  0xe2   :  { %v178_v35 = vpop.f32.mrf.mxu0 }
  0xe3   :  { %v179_v41 = vadd.f32 %v178_v35, %v38_v37  ;;  %v547_v47 = vmul.f32 -1.442695, %v157_v42 }
  0xe4   :  { %v180_v36 = vpop.f32.mrf.mxu0 }
  0xe5   :  { %v541_v48 = vmul.f32 -1.442695, %v179_v41  ;;  %v181_v17 = vadd.f32 %v180_v36, %v42_v1  ;;  %v163_v36 = vadd.f32 %v839_v26, %v42_v1 }
  0xe6   :  { %v184_v38 = vpop.f32.mrf.mxu0 }
  0xe7   :  { %v185_v39 = vadd.f32 %v184_v38, %v38_v37  ;;  %v551_v34 = vmul.f32 -1.442695, %v181_v17  ;;  %v550_v38 = vmul.f32 -1.442695, %v175_v23 }
  0xe8   :  { %v186_v40 = vpop.f32.mrf.mxu0 }
  0xe9   :  { %v542_v43 = vmul.f32 -1.442695, %v185_v39  ;;  %v187_v12 = vadd.f32 %v186_v40, %v42_v1 }
  0xea   :  { %v190_v44 = vpop.f32.mrf.mxu0 }
  0xeb   :  { %v191_v45 = vadd.f32 %v190_v44, %v38_v37  ;;  %629 = vpow2.f32 %v542_v43  ;;  %v552_v25 = vmul.f32 -1.442695, %v187_v12  ;;  %v548_v43 = vmul.f32 -1.442695, %v163_v36 }
  0xec   :  { %v192_v46 = vpop.f32.mrf.mxu0  ;;  %v151_v44 = vadd.f32 %v835_v22, %v42_v1 }
  0xed   :  { %v543_v49 = vmul.f32 -1.442695, %v191_v45  ;;  %v193_v9 = vadd.f32 %v192_v46, %v42_v1  ;;  %v145_v46 = vadd.f32 %v833_v20, %v42_v1 }
  0xee   :  { %v196_v51 = vpop.f32.mrf.mxu0 }
  0xef   :  { %631 = vpow2.f32 %v543_v49  ;;  %v197_v53 = vadd.f32 %v196_v51, %v38_v37  ;;  %v553_v18 = vmul.f32 -1.442695, %v193_v9  ;;  %v545_v54 = vmul.f32 -1.442695, %v145_v46 }
  0xf0   :  { %633 = vpow2.f32 %v541_v48  ;;  %v198_v0 = vpop.f32.mrf.mxu0  ;;  %v347_v9 = vadd.s32 10, %v345_v61 }
  0xf1   :  { %v544_v56 = vmul.f32 -1.442695, %v197_v53  ;;  %635 = vpow2.f32 %v540_v50  ;;  %v199_v5 = vadd.f32 %v198_v0, %v42_v1  ;;  %v546_v50 = vmul.f32 -1.442695, %v151_v44 }
  0xf3   :  { %637 = vpow2.f32 %v544_v56  ;;  %v554_v13 = vmul.f32 -1.442695, %v199_v5 }
  0xf4   :  { %639 = vpow2.f32 %v539_v55 }
  0xf5   :  { %641 = vpow2.f32 %v538_v58 }
  0xf6   :  { %643 = vpow2.f32 %v537_v60 }
  0xf7   :  { %645 = vpow2.f32 %v536_v62 }
  0xf8   :  { %v630_v2 = vpop.eup %629  ;;  %647 = vpow2.f32 %v535_v63 }
  0xf9   :  { %v238_v8 = vadd.f32 1.0, %v630_v2 }
  0xfc   :  { %v632_v3 = vpop.eup %631 }
  0xfd   :  { %v239_v6 = vadd.f32 1.0, %v632_v3  ;;  %v634_v7 = vpop.eup %633 }
  0xfe   :  { %v636_v10 = vpop.eup %635  ;;  %v237_v14 = vadd.f32 1.0, %v634_v7 }
  0xff   :  { %649 = vrcp.f32 %v239_v6  ;;  %v236_v19 = vadd.f32 1.0, %v636_v10 }
 0x100   :  { %v638_v11 = vpop.eup %637  ;;  %651 = vrcp.f32 %v238_v8  ;;  %v342_v8 = vand.u32 127, %v35_v27 }
 0x101   :  { %v240_v15 = vadd.f32 1.0, %v638_v11  ;;  %v640_v16 = vpop.eup %639 }
 0x102   :  { %v642_v21 = vpop.eup %641  ;;  %v235_v28 = vadd.f32 1.0, %v640_v16  ;;  %vm881_vm2 = vcmp.ge.s32.totalorder %v342_v8, %v345_v61  ;;  %vm348_vm3 = vcmp.lt.s32.totalorder %v342_v8, %v347_v9 }
 0x103   :  { %653 = vrcp.f32 %v240_v15  ;;  %v644_v31 = vpop.eup %643  ;;  %v234_v35 = vadd.f32 1.0, %v642_v21  ;;  %vm349_vm4 = vmand %vm881_vm2, %vm348_vm3 }
 0x104   :  { %655 = vpow2.f32 %v554_v13  ;;  %v646_v37 = vpop.eup %645  ;;  %v233_v39 = vadd.f32 1.0, %v644_v31 }
 0x105   :  { %657 = vrcp.f32 %v237_v14  ;;  %v648_v40 = vpop.eup %647  ;;  %v232_v41 = vadd.f32 1.0, %v646_v37 }
 0x106   :  { %659 = vpow2.f32 %v553_v18  ;;  %v231_v29 = vadd.f32 1.0, %v648_v40 }
 0x107   :  { %661 = vrcp.f32 %v236_v19 }
 0x108   :  { %663 = vpow2.f32 %v552_v25 }
 0x109   :  { %665 = vrcp.f32 %v235_v28 }
 0x10a   :  { %667 = vpow2.f32 %v551_v34 }
 0x10b   :  { %669 = vrcp.f32 %v234_v35 }
 0x10c   :  { %671 = vpow2.f32 %v550_v38  ;;  %v650_v45 = vpop.eup %649 }
 0x10d   :  { %673 = vrcp.f32 %v233_v39  ;;  %v652_v26 = vpop.eup %651  ;;  %v329_v51 = vmax.f32 %v650_v45, 1e-07 }
 0x10e   :  { %675 = vpow2.f32 %v549_v32  ;;  %v328_v55 = vmax.f32 %v652_v26, 1e-07  ;;  %v555_v32 = vsel %vm349_vm4, 1.0, %v733_v4 }
 0x10f   :  { %677 = vrcp.f32 %v232_v41  ;;  %v862_v58 = vmin.f32 %v329_v51, 0.9999999 }
 0x110   :  { %v654_v48 = vpop.eup %653  ;;  %679 = vpow2.f32 %v548_v43  ;;  %v867_v0 = vmin.f32 %v328_v55, 0.9999999 }
 0x111   :  { %v656_v49 = vpop.eup %655  ;;  %681 = vrcp.f32 %v231_v29  ;;  %v330_v24 = vmax.f32 %v654_v48, 1e-07 }
 0x112   :  { %v658_v52 = vpop.eup %657  ;;  %683 = vpow2.f32 %v547_v47  ;;  %v300_v20 = vadd.f32 1.0, %v656_v49 }
 0x113   :  { %v660_v53 = vpop.eup %659  ;;  %v859_v22 = vmin.f32 %v330_v24, 0.9999999  ;;  %685 = vpow2.f32 %v546_v50  ;;  %v327_v59 = vmax.f32 %v658_v52, 1e-07 }
 0x114   :  { %v662_v56 = vpop.eup %661  ;;  %687 = vpow2.f32 %v545_v54  ;;  %v299_v63 = vadd.f32 1.0, %v660_v53 }
 0x115   :  { %v664_v57 = vpop.eup %663  ;;  %581 = vmatpush3.msra.mxu1 %v859_v22  ;;  %v326_v1 = vmax.f32 %v662_v56, 1e-07  ;;  %689 = vrcp.f32 %v300_v20  ;;  %v871_v6 = vmin.f32 %v327_v59, 0.9999999 }
 0x116   :  { %v666_v60 = vpop.eup %665  ;;  %582 = vmatprep.subr.mxu1 %v733_v4  ;;  %v298_v5 = vadd.f32 1.0, %v664_v57  ;;  %691 = vrcp.f32 %v299_v63 }
 0x117   :  { %v668_v62 = vpop.eup %667  ;;  %583 = vmatpush3.msra.mxu1 %v862_v58  ;;  %v325_v7 = vmax.f32 %v666_v60, 1e-07  ;;  %v876_v12 = vmin.f32 %v326_v1, 0.9999999 }
 0x118   :  { %v670_v2 = vpop.eup %669  ;;  %584 = vmatprep.subr.mxu1 %v733_v4  ;;  %v297_v11 = vadd.f32 1.0, %v668_v62  ;;  %693 = vrcp.f32 %v298_v5 }
 0x119   :  { %v672_v3 = vpop.eup %671  ;;  %585 = vmatpush3.msra.mxu1 %v867_v0  ;;  %v324_v13 = vmax.f32 %v670_v2, 1e-07  ;;  %v335_v17 = vmin.f32 %v325_v7, 0.9999999 }
 0x11a   :  { %v674_v30 = vpop.eup %673  ;;  %586 = vmatprep.subr.mxu1 %v733_v4  ;;  %v296_v16 = vadd.f32 1.0, %v672_v3  ;;  %695 = vrcp.f32 %v297_v11 }
 0x11b   :  { %v676_v10 = vpop.eup %675  ;;  %587 = vmatpush3.msra.mxu1 %v871_v6  ;;  %v323_v18 = vmax.f32 %v674_v30, 1e-07  ;;  %v334_v23 = vmin.f32 %v324_v13, 0.9999999 }
 0x11c   :  { %v678_v14 = vpop.eup %677  ;;  %588 = vmatprep.subr.mxu1 %v733_v4  ;;  %v295_v21 = vadd.f32 1.0, %v676_v10  ;;  %697 = vrcp.f32 %v296_v16 }
 0x11d   :  { %v680_v15 = vpop.eup %679  ;;  %589 = vmatpush3.msra.mxu1 %v876_v12  ;;  %v322_v25 = vmax.f32 %v678_v14, 1e-07  ;;  %v333_v33 = vmin.f32 %v323_v18, 0.9999999 }
 0x11e   :  { %v682_v27 = vpop.eup %681  ;;  %590 = vmatprep.subr.mxu1 %v733_v4  ;;  %v294_v31 = vadd.f32 1.0, %v680_v15  ;;  %699 = vrcp.f32 %v295_v21 }
 0x11f   :  { %591 = vmatpush3.msra.mxu1 %v335_v17  ;;  %v684_v28 = vpop.eup %683  ;;  %v321_v34 = vmax.f32 %v682_v27, 1e-07  ;;  %v332_v36 = vmin.f32 %v322_v25, 0.9999999 }
 0x120   :  { %592 = vmatprep.subr.mxu1 %v733_v4  ;;  %v686_v35 = vpop.eup %685  ;;  %v293_v37 = vadd.f32 1.0, %v684_v28  ;;  %701 = vrcp.f32 %v294_v31 }
 0x121   :  { %593 = vmatpush3.msra.mxu1 %v334_v23  ;;  %v688_v38 = vpop.eup %687  ;;  %v292_v39 = vadd.f32 1.0, %v686_v35  ;;  %v331_v40 = vmin.f32 %v321_v34, 0.9999999 }
 0x122   :  { %594 = vmatprep.subr.mxu1 %v733_v4  ;;  %v690_v41 = vpop.eup %689  ;;  %v291_v42 = vadd.f32 1.0, %v688_v38  ;;  %703 = vrcp.f32 %v293_v37 }
 0x123   :  { %595 = vmatpush3.msra.mxu1 %v333_v33  ;;  %v435_v43 = vmul.f32 %v690_v41, %v859_v22  ;;  %v692_v29 = vpop.eup %691  ;;  %705 = vrcp.f32 %v292_v39 }
 0x124   :  { %596 = vmatprep.subr.mxu1 %v733_v4  ;;  %v434_v44 = vmul.f32 %v692_v29, %v862_v58  ;;  %707 = vrcp.f32 %v291_v42 }
 0x125   :  { %597 = vmatpush3.msra.mxu1 %v332_v36  ;;  %v694_v45 = vpop.eup %693 }
 0x126   :  { %598 = vmatprep.subr.mxu1 %v733_v4  ;;  %v433_v26 = vmul.f32 %v694_v45, %v867_v0 }
 0x127   :  { %599 = vmatpush3.msra.mxu1 %v331_v40  ;;  %v696_v46 = vpop.eup %695 }
 0x128   :  { %601 = vmatmul.mubr.msk.f32.vlgmr.msra.gmra.mxu1 %vm352_vm5, %v555_v32  ;;  %603 = vmatprep.subr.mxu1 %v733_v4  ;;  %v432_v47 = vmul.f32 %v696_v46, %v871_v6 }
 0x129   :  { %604 = vmatpush3.msra.mxu1 %v435_v43  ;;  %623 = vmatprep.mubr.msk.f32.mxu1 %vm734_vm1, %v733_v4  ;;  %v698_v48 = vpop.eup %697 }
 0x12a   :  { %605 = vmatprep.subr.mxu1 %v733_v4  ;;  %v431_v49 = vmul.f32 %v698_v48, %v876_v12 }
 0x12b   :  { %606 = vmatpush3.msra.mxu1 %v434_v44  ;;  %v700_v50 = vpop.eup %699 }
 0x12c   :  { %607 = vmatprep.subr.mxu1 %v733_v4  ;;  %v430_v24 = vmul.f32 %v700_v50, %v335_v17 }
 0x12d   :  { %608 = vmatpush3.msra.mxu1 %v433_v26  ;;  %v702_v51 = vpop.eup %701 }
 0x12e   :  { %609 = vmatprep.subr.mxu1 %v733_v4  ;;  %v429_v52 = vmul.f32 %v702_v51, %v334_v23 }
 0x12f   :  { %610 = vmatpush3.msra.mxu1 %v432_v47  ;;  %v704_v53 = vpop.eup %703 }
 0x130   :  { %611 = vmatprep.subr.mxu1 %v733_v4  ;;  %v428_v54 = vmul.f32 %v704_v53, %v333_v33  ;;  %v706_v22 = vpop.eup %705 }
 0x131   :  { %612 = vmatpush3.msra.mxu1 %v431_v49  ;;  %v427_v55 = vmul.f32 %v706_v22, %v332_v36  ;;  %v708_v56 = vpop.eup %707 }
 0x132   :  { %613 = vmatprep.subr.mxu1 %v733_v4  ;;  %v426_v57 = vmul.f32 %v708_v56, %v331_v40 }
 0x133   :  { %614 = vmatpush3.msra.mxu1 %v430_v24 }
 0x134   :  { %615 = vmatprep.subr.mxu1 %v733_v4 }
 0x135   :  { %616 = vmatpush3.msra.mxu1 %v429_v52 }
 0x136   :  { %617 = vmatprep.subr.mxu1 %v733_v4 }
 0x137   :  { %618 = vmatpush3.msra.mxu1 %v428_v54 }
 0x138   :  { %619 = vmatprep.subr.mxu1 %v733_v4 }
 0x139   :  { %620 = vmatpush3.msra.mxu1 %v427_v55 }
 0x13a   :  { %621 = vmatprep.subr.mxu1 %v733_v4 }
 0x13b   :  { %622 = vmatpush3.msra.mxu1 %v426_v57 }
 0x13c   :  { %624 = vmatmul.mubr.msk.f32.vlgmr.msra.gmra.mxu1 %vm352_vm5, %v555_v32 }
 0x1e8   :  { %v422_v20 = vpop.f32.mrf.mxu1 }
 0x1e9   :  { %709 = vrcp.f32 %v422_v20 }
 0x1ea   :  { %v602_v58 = vpop.f32.mrf.mxu1 }
 0x1f6   :  { %v710_v59 = vpop.eup %709 }
 0x1fc   :  { %v502_v60 = vpop.f32.mrf.mxu1 }
 0x1fd   :  { %v507_v61 = vmul.f32 %v710_v59, %v502_v60 }
 0x1fe   :  { %v625_v62 = vpop.f32.mrf.mxu1 }
 0x1ff   :  { %v508_v63 = vmax.f32 %v507_v61, 0.0 }
 0x201   :  { %v509_v0 = vmin.f32 %v508_v63, 1.0 }
 0x203   :  { %510 = vst [vmem:[#allocation2] sm:$0xff] %v509_v0 }
 0x204   :  { %722 = shalt.err (!%p719_p4)
}
 0x205   :  { %520 = dma.vmem_to_hbm [thread:$0]  %s518_s21, 128, %s918_s3, [#allocation3]  }
 0x206   :  { %731 = dma.done.wait [#allocation3], 128  }
 0x207   :  { %732 = vsyncadd [#allocation3], 4294967168 }
 0x208   :  { %524 = vsyncpa [#allocation3], 1 }

</bundles_post_ra>
